<compile_context>
chip_gen: v7x
topology: tpu7x:2x2x1
jax: 0.10.0
libtpu: 0.0.40
codegen_flags: <defaults>
</compile_context>

<pallas_src>
import functools
import math

import jax
import jax.numpy as jnp
from jax.experimental import pallas as pl
from jax.experimental.pallas import tpu as pltpu


def make_pe_table(max_len: int, d_model: int, dtype=jnp.float32) -> jnp.ndarray:
    """Sinusoidal positional-encoding table, shape (max_len, d_model).

    Built once at module init (review: hoist pe prep out of the per-call path).
    Kept in fp32 like the PyTorch buffer; the kernel adds in the promoted dtype
    and casts only the output.
    """
    position = jnp.arange(max_len, dtype=jnp.float32)[:, None]              # (max_len, 1)
    div_term = jnp.exp(
        jnp.arange(0, d_model, 2, dtype=jnp.float32) * (-math.log(10000.0) / d_model)
    )                                                                        # (ceil(d/2),)
    angles = position * div_term                                             # (max_len, ceil(d/2))
    pe = jnp.zeros((max_len, d_model), dtype=jnp.float32)
    pe = pe.at[:, 0::2].set(jnp.sin(angles))
    pe = pe.at[:, 1::2].set(jnp.cos(angles)[:, : d_model // 2])              # even d_model expected
    return pe.astype(dtype)


# ----------------------------- kernels ------------------------------------ #

def _pe_add_bcast_kernel(x_ref, pe_ref, o_ref):
    # x (ts, tb, D) + pe (ts, D) broadcast over the batch (sublane) axis on-chip.
    o_ref[...] = (x_ref[...] + pe_ref[...][:, None, :]).astype(o_ref.dtype)


def _pe_add_2d_kernel(x_ref, pe_ref, o_ref):
    # Same-shape lane-dense add: x (ts, D) + pe (ts, D).
    o_ref[...] = (x_ref[...] + pe_ref[...]).astype(o_ref.dtype)


# --------------------------- tuning helpers -------------------------------- #

@functools.lru_cache(maxsize=1)
def _tpu_tuning():
    """Per-generation (block_budget_bytes, vmem_limit_bytes, seq_axis_semantics)."""
    block_budget = 6 * 1024 * 1024        # safe on v7x (64 MiB physical VMEM per TC)
    vmem_limit = 48 * 1024 * 1024
    seq_sem = pltpu.PARALLEL
    try:
        vmem_cap = pltpu.get_tpu_info().vmem_capacity_bytes
        if vmem_cap is not None and vmem_cap >= 96 * 1024 * 1024:
            # v5e / v6e: 128 MiB physical VMEM -> bigger blocks, higher scoped limit.
            block_budget = 12 * 1024 * 1024
            vmem_limit = 64 * 1024 * 1024
    except Exception:
        pass
    try:
        kind = jax.devices()[0].device_kind.lower()
        if "v7" in kind or "7x" in kind:
            # Two TensorCores per chip: split the sequence grid axis across them.
            seq_sem = pltpu.CORE_PARALLEL
    except Exception:
        pass
    return block_budget, vmem_limit, seq_sem


def _seq_tile(S: int, row_bytes: int, budget: int) -> int:
    """Sequence-tile size: multiple of 8 (or full extent) within the byte budget."""
    ts = budget // max(row_bytes, 1)
    if ts >= S or S <= 8:
        return S
    return max(8, (ts // 8) * 8)


def _tiles_3d(S: int, B: int, D: int, itemsize: int, budget: int):
    """(seq_tile, batch_tile) for the 3-D path; splits the batch axis when a
    single 8-row block would already exceed the budget (huge B*D rows)."""
    tb = B
    if B % 8 == 0 and B > 8 and 8 * B * D * itemsize > budget:
        tb = ((budget // (8 * D * itemsize)) // 8) * 8
        tb = min(max(tb, 8), B)
    ts = _seq_tile(S, tb * D * itemsize, budget)
    return ts, tb


# ------------------------------ wrapper ------------------------------------ #

def positional_encoding_forward(
    x: jnp.ndarray,
    pe_table: jnp.ndarray,
    *,
    target_block_bytes: int | None = None,
    vmem_limit_bytes: int | None = None,
) -> jnp.ndarray:
    """x: (S, B, D); pe_table: (max_len, D) fp32. Returns x + pe[:S] (eval-mode dropout)."""
    S, B, D = x.shape
    max_len, D_pe = pe_table.shape
    assert D_pe == D and max_len >= S

    budget, vmem_limit, seq_sem = _tpu_tuning()
    if target_block_bytes is not None:
        budget = target_block_bytes
    if vmem_limit_bytes is not None:
        vmem_limit = vmem_limit_bytes
    itemsize = jnp.dtype(x.dtype).itemsize

    if D % 128 == 0 and B % 8 != 0:
        # Lane-dense 2-D path: x viewed as (S, B*D) (free contiguous reshape),
        # grid over (seq tiles, batch). Each block is a plain (ts, D) add; the pe
        # block index ignores the (inner) batch axis, so the same pe tile is
        # revisited without re-DMA. No sublane padding / masked stores.
        ts = _seq_tile(S, D * itemsize, budget)
        pe_in = pe_table if ts % 8 == 0 else pe_table[:S]   # full-extent block if ts==S<8k
        grid = (pl.cdiv(S, ts), B)
        cparams = pltpu.CompilerParams(
            dimension_semantics=(seq_sem, pltpu.ARBITRARY),
            vmem_limit_bytes=vmem_limit,
        )
        x2 = x.reshape(S, B * D)
        out2 = pl.pallas_call(
            _pe_add_2d_kernel,
            out_shape=jax.ShapeDtypeStruct((S, B * D), x.dtype),
            grid=grid,
            in_specs=[
                pl.BlockSpec((ts, D), lambda i, b: (i, b)),
                pl.BlockSpec((ts, D), lambda i, b: (i, 0)),
            ],
            out_specs=pl.BlockSpec((ts, D), lambda i, b: (i, b)),
            compiler_params=cparams,
        )(x2, pe_in)
        return out2.reshape(S, B, D)

    # 3-D broadcast path: main case (D % 128 == 0, B % 8 == 0) and the small /
    # non-128-aligned-D fallback (full-extent minor dims are legal; padding waste
    # only matters at toy scale). pe stays the small (ts, D) stream.
    ts, tb = _tiles_3d(S, B, D, itemsize, budget)
    pe_in = pe_table if ts % 8 == 0 else pe_table[:S]
    grid = (pl.cdiv(S, ts), pl.cdiv(B, tb))
    cparams = pltpu.CompilerParams(
        dimension_semantics=(seq_sem, pltpu.ARBITRARY),
        vmem_limit_bytes=vmem_limit,
    )
    return pl.pallas_call(
        _pe_add_bcast_kernel,
        out_shape=jax.ShapeDtypeStruct((S, B, D), x.dtype),
        grid=grid,
        in_specs=[
            pl.BlockSpec((ts, tb, D), lambda i, j: (i, j, 0)),
            pl.BlockSpec((ts, D), lambda i, j: (i, 0)),
        ],
        out_specs=pl.BlockSpec((ts, tb, D), lambda i, j: (i, j, 0)),
        compiler_params=cparams,
    )(x, pe_in)


# -------------------------------- tests ------------------------------------ #

if __name__ == "__main__":
    key = jax.random.PRNGKey(0)
    k1, k2, k3 = jax.random.split(key, 3)

    # Test 1: toy module-like shape (seq=8, batch=2, d_model=32)
    # -> fallback 3-D broadcast path (D not a multiple of 128).
    S, B, D = 8, 2, 32
    pe1 = make_pe_table(64, D)
    x1 = jax.random.normal(k1, (S, B, D), dtype=jnp.float32)
    out1 = jax.block_until_ready(positional_encoding_forward(x1, pe1))
    ref1 = x1 + pe1[:S][:, None, :]
    assert out1.shape == (S, B, D)
    assert jnp.allclose(out1, ref1, atol=1e-6, rtol=1e-6)

    # Test 2: D % 128 == 0 with B % 8 != 0 -> lane-dense (S, B*D) per-batch path.
    # Tiny block budget forces a real multi-tile grid (exercises pipelining +
    # a partial last sequence block).
    S2, B2, D2 = 24, 2, 128
    pe2 = make_pe_table(64, D2)
    x2 = jax.random.normal(k2, (S2, B2, D2), dtype=jnp.float32)
    out2 = jax.block_until_ready(
        positional_encoding_forward(x2, pe2, target_block_bytes=8 * 1024)
    )
    ref2 = x2 + pe2[:S2][:, None, :]
    assert out2.shape == (S2, B2, D2)
    assert jnp.allclose(out2, ref2, atol=1e-6, rtol=1e-6)

    # Test 3: D % 128 == 0 with B % 8 == 0 -> main 3-D broadcast path (tiled seq axis).
    S3, B3, D3 = 16, 8, 128
    pe3 = make_pe_table(64, D3)
    x3 = jax.random.normal(k3, (S3, B3, D3), dtype=jnp.float32)
    out3 = jax.block_until_ready(
        positional_encoding_forward(x3, pe3, target_block_bytes=8 * 1024)
    )
    ref3 = x3 + pe3[:S3][:, None, :]
    assert out3.shape == (S3, B3, D3)
    assert jnp.allclose(out3, ref3, atol=1e-6, rtol=1e-6)

    print("KERNEL_OK")
</pallas_src>

<mosaic_0001>
module attributes {stable_mosaic.version = 11 : i64} {
  func.func @_pe_add_bcast_kernel(%arg0: i32, %arg1: i32, %arg2: memref<8x2x32xf32, #tpu.memory_space<vmem>>, %arg3: memref<8x32xf32, #tpu.memory_space<vmem>>, %arg4: memref<8x2x32xf32, #tpu.memory_space<vmem>>) attributes {dimension_semantics = [#tpu.dimension_semantics<parallel>, #tpu.dimension_semantics<arbitrary>], iteration_bounds = array<i64: 1, 1>, scalar_prefetch = 0 : i64, scratch_operands = 0 : i64, tpu.core_type = #tpu.core_type<tc>, window_params = [{transform_indices = @transform_0, window_bounds = array<i64: 8, 2, 32>}, {transform_indices = @transform_1, window_bounds = array<i64: 8, 32>}, {transform_indices = @transform_2, window_bounds = array<i64: 8, 2, 32>}]} {
    %c0 = arith.constant 0 : index
    %c0_0 = arith.constant 0 : index
    %c0_1 = arith.constant 0 : index
    %0 = vector.load %arg2[%c0, %c0_0, %c0_1] : memref<8x2x32xf32, #tpu.memory_space<vmem>>, vector<8x2x32xf32>
    %c0_2 = arith.constant 0 : index
    %c0_3 = arith.constant 0 : index
    %1 = vector.load %arg3[%c0_2, %c0_3] : memref<8x32xf32, #tpu.memory_space<vmem>>, vector<8x32xf32>
    %2 = vector.shape_cast %1 : vector<8x32xf32> to vector<8x1x32xf32>
    %3 = vector.broadcast %2 : vector<8x1x32xf32> to vector<8x2x32xf32>
    %4 = arith.addf %0, %3 : vector<8x2x32xf32>
    %c0_4 = arith.constant 0 : index
    %c0_5 = arith.constant 0 : index
    %c0_6 = arith.constant 0 : index
    %5 = vector.load %arg4[%c0_4, %c0_5, %c0_6] : memref<8x2x32xf32, #tpu.memory_space<vmem>>, vector<8x2x32xf32>
    tpu.vector_store %arg4[%c0_4, %c0_5, %c0_6], %4 {strides = array<i32>} : memref<8x2x32xf32, #tpu.memory_space<vmem>>, vector<8x2x32xf32>,
    return
  }
  func.func @transform_0(%arg0: i32, %arg1: i32) -> (i32, i32, i32) {
    %c0_i32 = arith.constant 0 : i32
    %c0_i32_0 = arith.constant 0 : i32
    return %arg0, %arg1, %c0_i32 : i32, i32, i32
  }
  func.func @transform_1(%arg0: i32, %arg1: i32) -> (i32, i32) {
    %c0_i32 = arith.constant 0 : i32
    %c0_i32_0 = arith.constant 0 : i32
    return %arg0, %c0_i32 : i32, i32
  }
  func.func @transform_2(%arg0: i32, %arg1: i32) -> (i32, i32, i32) {
    %c0_i32 = arith.constant 0 : i32
    %c0_i32_0 = arith.constant 0 : i32
    return %arg0, %arg1, %c0_i32 : i32, i32, i32
  }
}

</mosaic_0001>

<bundles_post_ra>
// kernel: tpu_custom_call.1
= control target key start
LH: loop header
LB: loop body
LE: loop exit
PB: predicated region body
PF: predicated region fallthrough
CT: control target
= control target key end

     0   :  { %v26_v1 = vlaneseq  ;;  %v172_v2 = vmov 1966171168   ;;  %s238_s0 = inlined_call_operand.vmem [shape: f32[8,2,32], index: 0, kind: input, shape index: {}]   ;;  %s239_s1 = inlined_call_operand.vmem [shape: f32[64,32], index: 1, kind: input, shape index: {}]   ;;  %s240_s2 = inlined_call_operand.hbm [shape: f32[8,2,32], index: 2, kind: output, shape index: {}]  }
   0x1   :  { %v20_v0 = vld [vmem:[%s239_s1] sm:$0xff]  ;;  %v24_v3 = vunpack.c.l.s4 %v172_v2 }
   0x2   :  { %v27_v4 = vshrl.u32 %v26_v1, 7  ;;  %v22_v6 = vcombine.high %v20_v0, %v20_v0 }
   0x3   :  { %v25_v5 = vunpack.c.0.s8 %v24_v3 }
   0x4   :  { %7 = vsyncpa [#allocation3], 0  ;;  %v73_v9 = vsub.s32 0, %v27_v4  ;;  %v12_v15 = vld [vmem:[%s238_s0] sm:$0x3]  ;;  %vm119_vm0 = vcmask 254976  }
   0x5   :  { %v28_v7 = vsub.s32 %v25_v5, %v27_v4  ;;  %v16_v19 = vld [vmem:[%s238_s0 + $0x8] sm:$0x3]  ;;  %v13_v21 = vld [vmem:[%s238_s0 + $0x2] sm:$0x3]  ;;  %v14_v22 = vld [vmem:[%s238_s0 + $0x4] sm:$0x3] }
   0x6   :  { %v17_v29 = vld [vmem:[%s238_s0 + $0xa] sm:$0x3]  ;;  %v18_v30 = vld [vmem:[%s238_s0 + $0xc] sm:$0x3]  ;;  %v15_v31 = vld [vmem:[%s238_s0 + $0x6] sm:$0x3] }
   0x7   :  { %v29_v8 = vrot.slane %v20_v0, %v28_v7  ;;  %v36_v10 = vrot.slane %v22_v6, %v28_v7  ;;  %v19_v39 = vld [vmem:[%s238_s0 + $0xe] sm:$0x3]  ;;  %s173_s26 = smov [#allocation2]  }
   0x8   :  { %s133_s27 = sshll.u32 %s173_s26, 4  ;;  %s134_s27 = int_to_ptr.vmem [resolvable:$true] %s133_s27 }
   0x9   :  { %v45_v11 = vrot.slane %v29_v8, %v28_v7  ;;  %v37_v12 = vcombine.high %v29_v8, %v29_v8  ;;  %v52_v13 = vrot.slane %v36_v10, %v28_v7  ;;  %v38_v14 = vcombine.high %v36_v10, %v36_v10  ;;  %s148_s0 = scalar_lea.vmem %s134_s27, 256  ;;  %p153_p1 = scmp.lt.s32.totalorder %s134_s27, %s134_s27 }
   0xa   :  { %p149_p0 = scmp.ne.s32.totalorder %s134_s27, %s148_s0  ;;  %p154_p2 = scmp.lt.s32.totalorder %s148_s0, %s148_s0 }
   0xb   :  { %v74_v16 = vrot.slane %v45_v11, %v73_v9  ;;  %v59_v17 = vrot.slane %v37_v12, %v28_v7  ;;  %v67_v18 = vcombine.high %v45_v11, %v45_v11  ;;  %v90_v20 = vrot.slane %v52_v13, %v73_v9 }
   0xc   :  { %v66_v23 = vrot.slane %v38_v14, %v28_v7  ;;  %v68_v24 = vcombine.high %v52_v13, %v52_v13  ;;  %p155_p3 = por %p154_p2, %p153_p1 }
   0xd   :  { %v111_v25 = vadd.f32 %v74_v16, %v12_v15  ;;  %v78_v26 = vrot.slane %v59_v17, %v73_v9  ;;  %v82_v27 = vrot.slane %v67_v18, %v73_v9  ;;  %v69_v28 = vcombine.high %v59_v17, %v59_v17 }
   0xe   :  { %v115_v32 = vadd.f32 %v90_v20, %v16_v19  ;;  %v94_v33 = vrot.slane %v66_v23, %v73_v9  ;;  %v98_v34 = vrot.slane %v68_v24, %v73_v9  ;;  %v70_v35 = vcombine.high %v66_v23, %v66_v23  ;;  %p156_p4 = pnand %p155_p3, %p149_p0 }
   0xf   :  { %120 = vst.msk [vmem:[#allocation2] sm:$0x3] %vm119_vm0, %v111_v25  ;;  %v112_v36 = vadd.f32 %v78_v26, %v13_v21  ;;  %v113_v37 = vadd.f32 %v82_v27, %v14_v22  ;;  %v86_v38 = vrot.slane %v69_v28, %v73_v9 }
  0x10   :  { %124 = vst.msk [vmem:[#allocation2 + $0x8] sm:$0x3] %vm119_vm0, %v115_v32  ;;  %v116_v40 = vadd.f32 %v94_v33, %v17_v29  ;;  %v117_v41 = vadd.f32 %v98_v34, %v18_v30  ;;  %v102_v42 = vrot.slane %v70_v35, %v73_v9 }
  0x11   :  { %121 = vst.msk [vmem:[#allocation2 + $0x2] sm:$0x3] %vm119_vm0, %v112_v36  ;;  %122 = vst.msk [vmem:[#allocation2 + $0x4] sm:$0x3] %vm119_vm0, %v113_v37  ;;  %v114_v43 = vadd.f32 %v86_v38, %v15_v31 }
  0x12   :  { %125 = vst.msk [vmem:[#allocation2 + $0xa] sm:$0x3] %vm119_vm0, %v116_v40  ;;  %126 = vst.msk [vmem:[#allocation2 + $0xc] sm:$0x3] %vm119_vm0, %v117_v41  ;;  %v118_v44 = vadd.f32 %v102_v42, %v19_v39 }
  0x13   :  { %123 = vst.msk [vmem:[#allocation2 + $0x6] sm:$0x3] %vm119_vm0, %v114_v43 }
  0x14   :  { %127 = vst.msk [vmem:[#allocation2 + $0xe] sm:$0x3] %vm119_vm0, %v118_v44 }
  0x15   :  { %159 = shalt.err (!%p156_p4)
}
  0x16   :  { %s160_s30 = scalar_lea.hbm %s240_s2, 256 }
  0x17   :  { %p161_p5 = scmp.ne.s32.totalorder %s240_s2, %s160_s30  ;;  %p164_p6 = scmp.lt.u32.totalorder %s160_s30, %s240_s2 }
  0x19   :  { %p166_p7 = pnand %p164_p6, %p161_p5 }
  0x1b   :  { %169 = shalt.err (!%p166_p7)
}
  0x1c   :  { %s174_s7 = smov 32   ;;  %s175_s8 = smov 2  }
  0x1d   :  { %139 = dma.vmem_to_hbm [thread:$0]  %s134_s27, 256, %s240_s2, [#allocation3], %s174_s7, %s174_s7, %s175_s8  }
  0x1e   :  { %170 = dma.done.wait [#allocation3], 256  }
  0x1f   :  { %171 = vsyncadd [#allocation3], 4294967040 }
  0x20   :  { %143 = vsyncpa [#allocation3], 1 }

</bundles_post_ra>
